<compile_context>
chip_gen: v7x
topology: tpu7x:2x2x1
jax: 0.10.0
libtpu: 0.0.40
codegen_flags: <defaults>
</compile_context>

<pallas_src>
import jax
import jax.numpy as jnp
from jax import lax
from jax.experimental import pallas as pl
from jax.experimental.pallas import tpu as pltpu


# --------------------------- tiling heuristics --------------------------------

def _vmem_budget():
    """(per-input target bytes for one buffered block, vmem_limit_bytes)."""
    try:
        cap = int(pltpu.get_tpu_info().vmem_capacity_bytes)
    except Exception:
        cap = 64 << 20                       # assume the smallest (v7x) VMEM
    if cap > (64 << 20):                     # v5e / v6e: 128 MiB physical VMEM
        return 8 << 20, 48 << 20
    return 4 << 20, 32 << 20                 # v7x (64 MiB per TC) or unknown


def _pick_batch_tile(B):
    # (B_t, H_t) is the output block: second-to-last dim must be a multiple of
    # 8 or the full extent.
    return 8 if B % 8 == 0 else B


def _pick_hidden_tile(H, n_b_blocks):
    # Split H across the two v7x TensorCores when B alone yields a single
    # "parallel" block.  H_t must remain a multiple of 128 (lane tile).
    if n_b_blocks < 2 and H >= 256 and H % 256 == 0:
        return H // 2
    return H


def _pick_seq_tile(S, B_t, H_t, itemsize, n_inputs, n_buffers, target_bytes,
                   use_mxu):
    """Sequence rows per block.  Never requests a full-S block that busts the
    VMEM budget; callers use pl.cdiv grids + in-kernel tail masking instead."""
    per_row = n_inputs * n_buffers * B_t * H_t * itemsize
    if S * per_row <= target_bytes:
        return S                             # whole sequence fits in one block
    # When tiling: MXU path needs S_t on the lane axis of the [B_t,1,S_t] mask
    # block (multiple of 128); VPU path only needs sublane alignment.
    gran = 128 if use_mxu else max(8, 32 // max(1, itemsize))
    rows = max(gran, (target_bytes // per_row) // gran * gran)
    return min(S, rows)


# ------------------------------- kernel ---------------------------------------

def _make_avg_kernel(n_inputs, seq_len, seq_tile, mask_tail, use_mxu):
    """Kernel over grid (b, h, s); s is the innermost reduction axis."""

    def kernel(*refs):
        mask_ref, inv_den_ref = refs[0], refs[1]
        h_refs = refs[2:2 + n_inputs]
        out_ref = refs[2 + n_inputs]
        acc_ref = refs[3 + n_inputs]
        s = pl.program_id(2)

        @pl.when(s == 0)
        def _():
            acc_ref[...] = jnp.zeros_like(acc_ref)

        m = mask_ref[...]                    # MXU: [B_t,1,S_t]; VPU: [B_t,S_t,1]
        h = h_refs[0][...]                   # [B_t, S_t, H_t], storage dtype
        for r in h_refs[1:]:
            h = h + r[...]

        if mask_tail:
            # Ragged last S block: zero both operands' out-of-range rows so the
            # clamped/stale DMA contents can never reach the accumulator.
            base = seq_tile * s

            def _zero_tail(x, axis):
                pos = base + lax.broadcasted_iota(jnp.int32, x.shape, axis)
                return jnp.where(pos < seq_len, x, jnp.zeros_like(x))

            m = _zero_tail(m, 2 if use_mxu else 1)
            h = _zero_tail(h, 1)

        if use_mxu:
            # Batched vector-matrix product on the MXU, f32 accumulation:
            # [B_t,1,S_t] @ [B_t,S_t,H_t] -> [B_t,1,H_t]
            acc_ref[...] += lax.dot_general(
                m, h,
                dimension_numbers=(((2,), (1,)), ((0,), (0,))),
                preferred_element_type=jnp.float32)
        else:
            # Exact f32 VPU path (HBM-bound already at 4 B/elem).
            acc_ref[...] += jnp.sum(
                h.astype(jnp.float32) * m.astype(jnp.float32), axis=1)

        @pl.when(s == pl.num_programs(2) - 1)
        def _():
            acc = acc_ref[...]
            if use_mxu:
                acc = acc[:, 0, :]           # [B_t, H_t]
            out_ref[...] = (acc * inv_den_ref[...]).astype(out_ref.dtype)

    return kernel


# ------------------------------ wrapper ----------------------------------------

def _masked_avg_pool(attention_mask, hiddens, scale):
    """scale * sum_s(sum(hiddens) * mask) / sum_s(mask)  ->  [B, H]."""
    h0 = hiddens[0]
    B, S, H = h0.shape
    dtype = h0.dtype
    itemsize = dtype.itemsize
    n = len(hiddens)
    # bf16/f16: weighted reduce on the MXU; f32: exact VPU reduce.
    use_mxu = jnp.issubdtype(dtype, jnp.floating) and itemsize <= 2
    out_dtype = jnp.promote_types(dtype, attention_mask.dtype)

    B_t = _pick_batch_tile(B)
    H_t = _pick_hidden_tile(H, B // B_t)
    target_bytes, vmem_limit = _vmem_budget()

    n_buffers = 2
    S_t = _pick_seq_tile(S, B_t, H_t, itemsize, n, n_buffers, target_bytes, use_mxu)
    n_s = pl.cdiv(S, S_t)
    if n >= 2 and n_s >= 4:
        # Two interleaved HBM streams + many S steps: deepen input buffering
        # (review item) and re-budget the tile for three buffers.
        n_buffers = 3
        S_t = _pick_seq_tile(S, B_t, H_t, itemsize, n, n_buffers, target_bytes,
                             use_mxu)
        n_s = pl.cdiv(S, S_t)
    mask_tail = (S % S_t) != 0

    # Reciprocal denominator (with the /2 of the two-layer averages folded in)
    # is precomputed once here.  NOTE: fully-masked rows give inf/NaN, exactly
    # like the PyTorch reference.
    den = attention_mask.astype(jnp.float32).sum(-1, keepdims=True)       # [B,1]
    inv_den = scale / den

    if use_mxu:
        # Lane-dense mask block [B_t, 1, S_t]: LHS of the MXU contraction.
        mask_in = attention_mask.astype(dtype).reshape(B, 1, S)
        mask_spec = pl.BlockSpec((B_t, 1, S_t), lambda b, hh, ss: (b, 0, ss))
    else:
        # VPU path: mask rides the sublane axis like the hidden states.
        mask_in = attention_mask.astype(jnp.float32).reshape(B, S, 1)
        mask_spec = pl.BlockSpec((B_t, S_t, 1), lambda b, hh, ss: (b, ss, 0))

    h_kwargs = {"pipeline_mode": pl.Buffered(3)} if n_buffers == 3 else {}
    h_specs = [pl.BlockSpec((B_t, S_t, H_t), lambda b, hh, ss: (b, ss, hh),
                            **h_kwargs)
               for _ in range(n)]

    acc_shape = (B_t, 1, H_t) if use_mxu else (B_t, H_t)
    kernel = _make_avg_kernel(n, S, S_t, mask_tail, use_mxu)

    cost = pl.CostEstimate(
        flops=2 * n * B * S * H,
        transcendentals=0,
        bytes_accessed=(n * B * S * H * itemsize
                        + B * S * attention_mask.dtype.itemsize
                        + B * H * out_dtype.itemsize))

    return pl.pallas_call(
        kernel,
        out_shape=jax.ShapeDtypeStruct((B, H), out_dtype),
        grid=(B // B_t, H // H_t, n_s),
        in_specs=[mask_spec,
                  pl.BlockSpec((B_t, 1), lambda b, hh, ss: (b, 0)),
                  *h_specs],
        out_specs=pl.BlockSpec((B_t, H_t), lambda b, hh, ss: (b, hh)),
        scratch_shapes=[pltpu.VMEM(acc_shape, jnp.float32)],
        compiler_params=pltpu.CompilerParams(
            dimension_semantics=("parallel", "parallel", "arbitrary"),
            vmem_limit_bytes=vmem_limit),
        cost_estimate=cost,
    )(mask_in, inv_den, *hiddens)


# ------------------------------- module ----------------------------------------

class Outputs:
    """Minimal stand-in for the HF model output object."""

    def __init__(self, last_hidden_state, pooler_output, hidden_states):
        self.last_hidden_state = last_hidden_state
        self.pooler_output = pooler_output
        self.hidden_states = hidden_states


class Pooler:
    """JAX/Pallas port of the parameter-free Pooler module."""

    def __init__(self, pooler_type):
        assert pooler_type in ['cls', 'cls_before_pooler', 'avg',
                               'avg_top2', 'avg_first_last'], \
            'unrecognized pooling type %s' % pooler_type
        self.pooler_type = pooler_type

    def __call__(self, attention_mask, outputs):
        last_hidden = outputs.last_hidden_state
        hidden_states = outputs.hidden_states
        if self.pooler_type in ['cls_before_pooler', 'cls']:
            # Pure strided copy of B*H elements: a plain XLA slice reads exactly
            # the required bytes; a Pallas kernel only adds DMA + step overhead
            # (perf-review item #1).
            return last_hidden[:, 0]
        elif self.pooler_type == 'avg':
            return _masked_avg_pool(attention_mask, (last_hidden,), 1.0)
        elif self.pooler_type == 'avg_first_last':
            return _masked_avg_pool(
                attention_mask, (hidden_states[0], hidden_states[-1]), 0.5)
        elif self.pooler_type == 'avg_top2':
            return _masked_avg_pool(
                attention_mask, (hidden_states[-1], hidden_states[-2]), 0.5)
        raise NotImplementedError


# --------------------------- reference (pure JAX) --------------------------------

def _ref_pooler(pooler_type, attention_mask, outputs):
    last_hidden = outputs.last_hidden_state
    hidden_states = outputs.hidden_states
    m = attention_mask.astype(jnp.float32)
    if pooler_type in ['cls_before_pooler', 'cls']:
        return last_hidden[:, 0]
    if pooler_type == 'avg':
        return (last_hidden * m[:, :, None]).sum(1) / m.sum(-1)[:, None]
    if pooler_type == 'avg_first_last':
        h = (hidden_states[0] + hidden_states[-1]) / 2.0
        return (h * m[:, :, None]).sum(1) / m.sum(-1)[:, None]
    if pooler_type == 'avg_top2':
        h = (hidden_states[-1] + hidden_states[-2]) / 2.0
        return (h * m[:, :, None]).sum(1) / m.sum(-1)[:, None]
    raise NotImplementedError


# ----------------------------------- main ----------------------------------------

if __name__ == "__main__":
    key = jax.random.PRNGKey(0)
    B, S, H = 2, 8, 32
    n_layers = 3   # embeddings + 2 transformer layers -> 3 hidden_states entries

    keys = jax.random.split(key, n_layers + 1)
    hidden_states = tuple(
        jax.random.normal(keys[i], (B, S, H), dtype=jnp.float32)
        for i in range(n_layers))
    pooler_output = jax.random.normal(keys[n_layers], (B, H), dtype=jnp.float32)

    # attention mask with some padding (lengths 8 and 5)
    lengths = jnp.array([8, 5], dtype=jnp.int32)
    attention_mask = (jnp.arange(S)[None, :] < lengths[:, None]).astype(jnp.float32)

    ptypes = ['cls', 'cls_before_pooler', 'avg', 'avg_top2', 'avg_first_last']
    ok = True

    # float32 inputs -> exact VPU reduction path (tight tolerance).
    outputs_f32 = Outputs(hidden_states[-1], pooler_output, hidden_states)
    for ptype in ptypes:
        got = jax.block_until_ready(Pooler(ptype)(attention_mask, outputs_f32))
        want = _ref_pooler(ptype, attention_mask, outputs_f32)
        ok = ok and got.shape == (B, H)
        ok = ok and bool(jnp.allclose(got.astype(jnp.float32),
                                      want.astype(jnp.float32),
                                      atol=1e-5, rtol=1e-5))

    # bfloat16 inputs -> MXU mask-weighted reduction path (bf16 tolerance).
    hs_bf16 = tuple(h.astype(jnp.bfloat16) for h in hidden_states)
    outputs_bf16 = Outputs(hs_bf16[-1], pooler_output.astype(jnp.bfloat16), hs_bf16)
    for ptype in ptypes:
        got = jax.block_until_ready(Pooler(ptype)(attention_mask, outputs_bf16))
        want = _ref_pooler(ptype, attention_mask, outputs_bf16)
        ok = ok and got.shape == (B, H)
        ok = ok and bool(jnp.allclose(got.astype(jnp.float32),
                                      want.astype(jnp.float32),
                                      atol=2e-2, rtol=2e-2))

    if ok:
        print("KERNEL_OK")
</pallas_src>

<mosaic_0001>
module attributes {stable_mosaic.version = 11 : i64} {
  func.func @kernel(%arg0: i32, %arg1: i32, %arg2: i32, %arg3: memref<2x8x1xf32, #tpu.memory_space<vmem>>, %arg4: memref<2x1xf32, #tpu.memory_space<vmem>>, %arg5: memref<2x8x32xf32, #tpu.memory_space<vmem>>, %arg6: memref<2x32xf32, #tpu.memory_space<vmem>>, %arg7: memref<2x32xf32, #tpu.memory_space<vmem>>) attributes {dimension_semantics = [#tpu.dimension_semantics<parallel>, #tpu.dimension_semantics<parallel>, #tpu.dimension_semantics<arbitrary>], iteration_bounds = array<i64: 1, 1, 1>, scalar_prefetch = 0 : i64, scratch_operands = 1 : i64, tpu.core_type = #tpu.core_type<tc>, window_params = [{transform_indices = @transform_0, window_bounds = array<i64: 2, 8, 1>}, {transform_indices = @transform_1, window_bounds = array<i64: 2, 1>}, {transform_indices = @transform_2, window_bounds = array<i64: 2, 8, 32>}, {transform_indices = @transform_3, window_bounds = array<i64: 2, 32>}]} {
    %c0_i32 = arith.constant 0 : i32
    %0 = arith.cmpi eq, %arg2, %c0_i32 : i32
    %1 = arith.extui %0 : i1 to i32
    %c0_i32_0 = arith.constant 0 : i32
    %2 = arith.cmpi ne, %1, %c0_i32_0 : i32
    scf.if %2 {
      %cst_12 = arith.constant 0.000000e+00 : f32
      %14 = vector.broadcast %cst_12 : f32 to vector<2x32xf32>
      %c0_13 = arith.constant 0 : index
      %c0_14 = arith.constant 0 : index
      %15 = vector.load %arg7[%c0_13, %c0_14] : memref<2x32xf32, #tpu.memory_space<vmem>>, vector<2x32xf32>
      tpu.vector_store %arg7[%c0_13, %c0_14], %14 {strides = array<i32>} : memref<2x32xf32, #tpu.memory_space<vmem>>, vector<2x32xf32>,
    } else {
    }
    %c0 = arith.constant 0 : index
    %c0_1 = arith.constant 0 : index
    %c0_2 = arith.constant 0 : index
    %3 = vector.load %arg3[%c0, %c0_1, %c0_2] : memref<2x8x1xf32, #tpu.memory_space<vmem>>, vector<2x8x1xf32>
    %c0_3 = arith.constant 0 : index
    %c0_4 = arith.constant 0 : index
    %c0_5 = arith.constant 0 : index
    %4 = vector.load %arg5[%c0_3, %c0_4, %c0_5] : memref<2x8x32xf32, #tpu.memory_space<vmem>>, vector<2x8x32xf32>
    %c0_6 = arith.constant 0 : index
    %c0_7 = arith.constant 0 : index
    %5 = vector.load %arg7[%c0_6, %c0_7] : memref<2x32xf32, #tpu.memory_space<vmem>>, vector<2x32xf32>
    %6 = vector.broadcast %3 : vector<2x8x1xf32> to vector<2x8x32xf32>
    %7 = arith.mulf %4, %6 : vector<2x8x32xf32>
    %cst = arith.constant dense<0.000000e+00> : vector<2x32xf32>
    %8 = vector.multi_reduction <add>, %7, %cst [1] : vector<2x8x32xf32> to vector<2x32xf32>
    %9 = arith.addf %5, %8 : vector<2x32xf32>
    %c0_8 = arith.constant 0 : index
    %c0_9 = arith.constant 0 : index
    %10 = vector.load %arg7[%c0_8, %c0_9] : memref<2x32xf32, #tpu.memory_space<vmem>>, vector<2x32xf32>
    tpu.vector_store %arg7[%c0_8, %c0_9], %9 {strides = array<i32>} : memref<2x32xf32, #tpu.memory_space<vmem>>, vector<2x32xf32>,
    %c0_i32_10 = arith.constant 0 : i32
    %11 = arith.cmpi eq, %arg2, %c0_i32_10 : i32
    %12 = arith.extui %11 : i1 to i32
    %c0_i32_11 = arith.constant 0 : i32
    %13 = arith.cmpi ne, %12, %c0_i32_11 : i32
    scf.if %13 {
      %c0_12 = arith.constant 0 : index
      %c0_13 = arith.constant 0 : index
      %14 = vector.load %arg7[%c0_12, %c0_13] : memref<2x32xf32, #tpu.memory_space<vmem>>, vector<2x32xf32>
      %c0_14 = arith.constant 0 : index
      %c0_15 = arith.constant 0 : index
      %15 = vector.load %arg4[%c0_14, %c0_15] : memref<2x1xf32, #tpu.memory_space<vmem>>, vector<2x1xf32>
      %16 = vector.broadcast %15 : vector<2x1xf32> to vector<2x32xf32>
      %17 = arith.mulf %14, %16 : vector<2x32xf32>
      %c0_16 = arith.constant 0 : index
      %c0_17 = arith.constant 0 : index
      %18 = vector.load %arg6[%c0_16, %c0_17] : memref<2x32xf32, #tpu.memory_space<vmem>>, vector<2x32xf32>
      tpu.vector_store %arg6[%c0_16, %c0_17], %17 {strides = array<i32>} : memref<2x32xf32, #tpu.memory_space<vmem>>, vector<2x32xf32>,
    } else {
    }
    return
  }
  func.func @transform_0(%arg0: i32, %arg1: i32, %arg2: i32) -> (i32, i32, i32) {
    %c0_i32 = arith.constant 0 : i32
    %c0_i32_0 = arith.constant 0 : i32
    return %arg0, %arg2, %c0_i32 : i32, i32, i32
  }
  func.func @transform_1(%arg0: i32, %arg1: i32, %arg2: i32) -> (i32, i32) {
    %c0_i32 = arith.constant 0 : i32
    %c0_i32_0 = arith.constant 0 : i32
    return %arg0, %c0_i32 : i32, i32
  }
  func.func @transform_2(%arg0: i32, %arg1: i32, %arg2: i32) -> (i32, i32, i32) {
    %c0_i32 = arith.constant 0 : i32
    return %arg0, %arg2, %arg1 : i32, i32, i32
  }
  func.func @transform_3(%arg0: i32, %arg1: i32, %arg2: i32) -> (i32, i32) {
    %c0_i32 = arith.constant 0 : i32
    return %arg0, %arg1 : i32, i32
  }
}

</mosaic_0001>

<bundles_post_ra>
// kernel: tpu_custom_call.1
= control target key start
LH: loop header
LB: loop body
LE: loop exit
PB: predicated region body
PF: predicated region fallthrough
CT: control target
= control target key end

     0   :  { %v116_v2 = vmov 0   ;;  %s169_s0 = inlined_call_operand.vmem [shape: f32[2,8,1], index: 0, kind: input, shape index: {}]   ;;  %s170_s1 = inlined_call_operand.vmem [shape: f32[2,1], index: 1, kind: input, shape index: {}]   ;;  %s171_s2 = inlined_call_operand.vmem [shape: f32[2,8,32], index: 2, kind: input, shape index: {}]   ;;  %s172_s3 = inlined_call_operand.hbm [shape: f32[2,32], index: 3, kind: output, shape index: {}]  }
   0x1   :  { %v21_v0 = vld [vmem:[%s169_s0] sm:$0xff]  ;;  %90 = vset.pattern.permute.xlu0 %v116_v2  ;;  %91 = vset.pattern.permute.xlu1 %v116_v2 }
   0x2   :  { %v65_v1 = vld [vmem:[%s170_s1] sm:$0x3] }
   0x3   :  { %8 = vsyncpa [#allocation4], 0  ;;  %28 = vperm.xlu0 %90, %v21_v0   ;;  %68 = vperm.xlu1 %91, %v65_v1   ;;  %v22_v3 = vld [vmem:[%s169_s0 + $0x8] sm:$0xff]  ;;  %vm19_vm0 = vcmask 254976   ;;  %v117_v4 = vmov 0.0   ;;  %v23_v5 = vld [vmem:[%s171_s2] sm:$0xff] }
   0x4   :  { %20 = vst.msk [vmem:[#allocation2] sm:$0x3] %vm19_vm0, %v117_v4  ;;  %vm38_vm1 = vcmask 261120   ;;  %v24_v8 = vld [vmem:[%s171_s2 + $0x8] sm:$0xff]  ;;  %vm55_vm2 = vcmask 1041409   ;;  %s118_s0 = smov [#allocation3]  }
   0x5   :  { %s79_s2 = sshll.u32 %s118_s0, 4  ;;  %s80_s2 = int_to_ptr.vmem [resolvable:$true] %s79_s2 }
   0x6   :  { %s92_s21 = scalar_lea.vmem %s80_s2, 32  ;;  %p97_p1 = scmp.lt.s32.totalorder %s80_s2, %s80_s2 }
   0x7   :  { %33 = vperm.xlu0 %90, %v22_v3   ;;  %p93_p0 = scmp.ne.s32.totalorder %s80_s2, %s92_s21  ;;  %p98_p2 = scmp.lt.s32.totalorder %s92_s21, %s92_s21 }
   0x9   :  { %p99_p3 = por %p98_p2, %p97_p1 }
   0xb   :  { %v25_v25 = vld [vmem:[#allocation2] sm:$0x3]  ;;  %p100_p4 = pnand %p99_p3, %p93_p0 }
  0x82   :  { %v29_v6 = vpop.permute.xlu0 %28  ;;  %v69_v28 = vpop.permute.xlu1 %68 }
  0x83   :  { %v36_v7 = vmul.f32 %v29_v6, %v23_v5 }
  0x85   :  { %v39_v9 = vsel %vm38_vm1, %v36_v7, 0.0 }
  0x86   :  { %v40_v10 = vrot.slane %v39_v9, 4  ;;  %v34_v11 = vpop.permute.xlu0 %33 }
  0x87   :  { %v37_v12 = vmul.f32 %v34_v11, %v24_v8 }
  0x88   :  { %v41_v13 = vadd.f32 %v40_v10, %v39_v9 }
  0x89   :  { %v46_v14 = vsel %vm38_vm1, %v37_v12, 0.0 }
  0x8a   :  { %v42_v15 = vrot.slane %v41_v13, 2  ;;  %v47_v16 = vrot.slane %v46_v14, 4 }
  0x8c   :  { %v43_v17 = vadd.f32 %v42_v15, %v41_v13  ;;  %v48_v18 = vadd.f32 %v47_v16, %v46_v14 }
  0x8e   :  { %v49_v19 = vrot.slane %v48_v18, 2  ;;  %v44_v20 = vrot.slane %v43_v17, 1 }
  0x90   :  { %v50_v21 = vadd.f32 %v49_v19, %v48_v18  ;;  %v45_v23 = vadd.f32 %v44_v20, %v43_v17 }
  0x92   :  { %v51_v22 = vrot.slane %v50_v21, 1 }
  0x94   :  { %v52_v24 = vadd.f32 %v51_v22, %v50_v21 }
  0x96   :  { %v56_v26 = vsel %vm55_vm2, %v52_v24, %v45_v23 }
  0x97   :  { %v58_v27 = vadd.f32 %v56_v26, %v25_v25 }
  0x99   :  { %60 = vst.msk [vmem:[#allocation2] sm:$0x3] %vm19_vm0, %v58_v27 }
  0xa0   :  { %v64_v29 = vld [vmem:[#allocation2] sm:$0x3] }
  0xa1   :  { %v71_v30 = vmul.f32 %v69_v28, %v64_v29 }
  0xa3   :  { %72 = vst.msk [vmem:[#allocation3] sm:$0x3] %vm19_vm0, %v71_v30 }
  0xa4   :  { %103 = shalt.err (!%p100_p4)
}
  0xa5   :  { %s104_s24 = scalar_lea.hbm %s172_s3, 32 }
  0xa6   :  { %p105_p5 = scmp.ne.s32.totalorder %s172_s3, %s104_s24  ;;  %p108_p6 = scmp.lt.u32.totalorder %s104_s24, %s172_s3 }
  0xa8   :  { %p110_p7 = pnand %p108_p6, %p105_p5 }
  0xaa   :  { %113 = shalt.err (!%p110_p7)
}
  0xab   :  { %82 = dma.vmem_to_hbm [thread:$0]  %s80_s2, 32, %s172_s3, [#allocation4]  }
  0xac   :  { %114 = dma.done.wait [#allocation4], 32  }
  0xad   :  { %115 = vsyncadd [#allocation4], 4294967264 }
  0xae   :  { %86 = vsyncpa [#allocation4], 1 }

</bundles_post_ra>
